<compile_context>
chip_gen: v7x
topology: tpu7x:2x2x1
jax: 0.10.0
libtpu: 0.0.40
codegen_flags: <defaults>
</compile_context>

<pallas_src>
import jax
import jax.numpy as jnp
from jax.experimental import pallas as pl
from jax.experimental.pallas import tpu as pltpu


def _round_up(n, m):
    return ((n + m - 1) // m) * m


def _mlp_kernel(x_ref, w1_ref, b1_ref, w2_ref, b2_ref, w3_ref, b3_ref, o_ref):
    hi = jax.lax.Precision.HIGHEST

    x = x_ref[...]                                   # (tb, D)  f32

    # fc1 -> ReLU, lane-major: (16, D) @ (tb, D)^T -> (16, tb)  (MXU A @ B^T)
    h1 = jax.lax.dot_general(
        w1_ref[...], x,
        dimension_numbers=(((1,), (1,)), ((), ())),
        precision=hi, preferred_element_type=jnp.float32)
    h1 = jnp.maximum(h1 + b1_ref[...], 0.0)          # bias (16,1) broadcasts on lanes

    # fc2 -> ReLU: (8, 16) @ (16, tb) -> (8, tb)
    h2 = jnp.dot(w2_ref[...], h1, precision=hi,
                 preferred_element_type=jnp.float32)
    h2 = jnp.maximum(h2 + b2_ref[...], 0.0)

    # fc3 -> Sigmoid: (1, 8) @ (8, tb) -> (1, tb)
    h3 = jnp.dot(w3_ref[...], h2, precision=hi,
                 preferred_element_type=jnp.float32)
    o_ref[...] = jax.nn.sigmoid(h3 + b3_ref[...])    # (1, tb) lane-dense store


def employee_task_model(x, params):
    """Forward pass of EmployeeTaskModel.

    x: (B, D) float32
    params (PyTorch nn.Linear layout, weights (out, in), biases as columns):
        w1 (16, D), b1 (16, 1), w2 (8, 16), b2 (8, 1), w3 (1, 8), b3 (1, 1)
    returns: (B, 1) float32
    """
    B, D = x.shape
    w1, b1 = params["w1"], params["b1"]
    w2, b2 = params["w2"], params["b2"]
    w3, b3 = params["w3"], params["b3"]

    # ---- tile-size selection (the kernel is purely HBM-bandwidth-bound) ----
    # HBM bytes of x per grid step: target ~2 MiB so the ~0.35 us fixed
    # per-step overhead is <1% and the DMA pipeline tracks the HBM roofline.
    tb_hbm = (2 * 1024 * 1024) // (D * 4)
    # Padding-aware VMEM footprint per batch row: double-buffered f32 x row
    # padded to 128 lanes + lane-major f32 intermediates (16 + 8 rows) +
    # double-buffered f32 output row.  Keep the working set under ~20 MiB so
    # the same tile choice is safe on v7x's 64 MiB physical VMEM.
    lane_d = max(_round_up(D, 128), 128)
    per_row_bytes = 2 * lane_d * 4 + (16 + 8) * 4 + 2 * 4
    tb_vmem = (20 * 1024 * 1024) // per_row_bytes
    # Keep >= 4 grid steps when the batch allows it (>= 2 per TensorCore on
    # v7x) so both cores keep their double-buffered pipelines full.
    tb_nt = max(_round_up(pl.cdiv(B, 4), 8), 512)
    tb = min(tb_hbm, tb_vmem, tb_nt, _round_up(B, 8))
    tb = max(8, (tb // 8) * 8)
    nt = pl.cdiv(B, tb)

    cost = pl.CostEstimate(
        flops=2 * B * (D * 16 + 16 * 8 + 8 * 1),
        transcendentals=B,
        bytes_accessed=B * D * 4 + nt * tb * 4
        + (16 * D + 16 + 8 * 16 + 8 + 8 + 1) * 4,
    )

    out = pl.pallas_call(
        _mlp_kernel,
        out_shape=jax.ShapeDtypeStruct((nt, tb), jnp.float32),
        grid=(nt,),
        in_specs=[
            pl.BlockSpec((tb, D), lambda i: (i, 0)),      # x: streamed over batch
            pl.BlockSpec(w1.shape, lambda i: (0, 0)),     # weights/biases:
            pl.BlockSpec(b1.shape, lambda i: (0, 0)),     #   constant block index
            pl.BlockSpec(w2.shape, lambda i: (0, 0)),     #   -> VMEM-resident
            pl.BlockSpec(b2.shape, lambda i: (0, 0)),     #   across all steps
            pl.BlockSpec(w3.shape, lambda i: (0, 0)),
            pl.BlockSpec(b3.shape, lambda i: (0, 0)),
        ],
        out_specs=pl.BlockSpec((1, tb), lambda i: (i, 0)),  # lane-dense output slab
        compiler_params=pltpu.CompilerParams(
            dimension_semantics=("parallel",),            # megacore on v7x
            vmem_limit_bytes=48 * 1024 * 1024,            # headroom over ~20 MiB
        ),
        cost_estimate=cost,
    )(x, w1, b1, w2, b2, w3, b3)

    # (nt, tb) row-major == batch order; drop tail padding, restore (B, 1).
    return out.reshape(nt * tb)[:B].reshape(B, 1)


def init_params(key, input_dim):
    """Deterministic init matching nn.Linear: weights (out, in), biases as columns."""
    ks = jax.random.split(key, 6)
    s1 = 1.0 / jnp.sqrt(float(input_dim))
    s2 = 1.0 / jnp.sqrt(16.0)
    s3 = 1.0 / jnp.sqrt(8.0)
    return {
        "w1": jax.random.uniform(ks[0], (16, input_dim), jnp.float32, -s1, s1),
        "b1": jax.random.uniform(ks[1], (16, 1), jnp.float32, -s1, s1),
        "w2": jax.random.uniform(ks[2], (8, 16), jnp.float32, -s2, s2),
        "b2": jax.random.uniform(ks[3], (8, 1), jnp.float32, -s2, s2),
        "w3": jax.random.uniform(ks[4], (1, 8), jnp.float32, -s3, s3),
        "b3": jax.random.uniform(ks[5], (1, 1), jnp.float32, -s3, s3),
    }


def _reference(x, p):
    hi = jax.lax.Precision.HIGHEST
    h1 = jnp.maximum(jnp.dot(x, p["w1"].T, precision=hi) + p["b1"].T, 0.0)
    h2 = jnp.maximum(jnp.dot(h1, p["w2"].T, precision=hi) + p["b2"].T, 0.0)
    return jax.nn.sigmoid(jnp.dot(h2, p["w3"].T, precision=hi) + p["b3"].T)


if __name__ == "__main__":
    key = jax.random.PRNGKey(0)
    k_x, k_p = jax.random.split(key)

    batch, input_dim = 8, 32
    x = jax.random.normal(k_x, (batch, input_dim), jnp.float32)
    params = init_params(k_p, input_dim)

    out = employee_task_model(x, params)
    out = jax.block_until_ready(out)

    ref = _reference(x, params)
    assert out.shape == (batch, 1), out.shape
    assert jnp.allclose(out, ref, atol=1e-4, rtol=1e-4), "mismatch vs reference"

    print("KERNEL_OK")
</pallas_src>

<mosaic_0001>
module attributes {stable_mosaic.version = 11 : i64} {
  func.func @_mlp_kernel(%arg0: i32, %arg1: memref<8x32xf32, #tpu.memory_space<vmem>>, %arg2: memref<16x32xf32, #tpu.memory_space<vmem>>, %arg3: memref<16x1xf32, #tpu.memory_space<vmem>>, %arg4: memref<8x16xf32, #tpu.memory_space<vmem>>, %arg5: memref<8x1xf32, #tpu.memory_space<vmem>>, %arg6: memref<1x8xf32, #tpu.memory_space<vmem>>, %arg7: memref<1x1xf32, #tpu.memory_space<vmem>>, %arg8: memref<1x8xf32, #tpu.memory_space<vmem>>) attributes {dimension_semantics = [#tpu.dimension_semantics<parallel>], iteration_bounds = array<i64: 1>, scalar_prefetch = 0 : i64, scratch_operands = 0 : i64, tpu.core_type = #tpu.core_type<tc>, window_params = [{transform_indices = @transform_0, window_bounds = array<i64: 8, 32>}, {pipeline_mode = #tpu.pipeline_mode<synchronous>, transform_indices = @transform_1, window_bounds = array<i64: 16, 32>}, {pipeline_mode = #tpu.pipeline_mode<synchronous>, transform_indices = @transform_2, window_bounds = array<i64: 16, 1>}, {pipeline_mode = #tpu.pipeline_mode<synchronous>, transform_indices = @transform_3, window_bounds = array<i64: 8, 16>}, {pipeline_mode = #tpu.pipeline_mode<synchronous>, transform_indices = @transform_4, window_bounds = array<i64: 8, 1>}, {pipeline_mode = #tpu.pipeline_mode<synchronous>, transform_indices = @transform_5, window_bounds = array<i64: 1, 8>}, {pipeline_mode = #tpu.pipeline_mode<synchronous>, transform_indices = @transform_6, window_bounds = array<i64: 1, 1>}, {transform_indices = @transform_7, window_bounds = array<i64: 1, 8>}]} {
    %c0 = arith.constant 0 : index
    %c0_0 = arith.constant 0 : index
    %0 = vector.load %arg1[%c0, %c0_0] : memref<8x32xf32, #tpu.memory_space<vmem>>, vector<8x32xf32>
    %c0_1 = arith.constant 0 : index
    %c0_2 = arith.constant 0 : index
    %1 = vector.load %arg2[%c0_1, %c0_2] : memref<16x32xf32, #tpu.memory_space<vmem>>, vector<16x32xf32>
    %cst = arith.constant dense<0.000000e+00> : vector<16x8xf32>
    %2 = tpu.matmul %1, %0, %cst {dimension_numbers = #tpu.dot_dimension_numbers<[1], [1], [0], [0], [0, 0, 1, 0], [], []>, precision = #tpu.contract_precision<fp32>} : vector<16x32xf32>, vector<8x32xf32>, vector<16x8xf32> -> vector<16x8xf32>
    %c0_3 = arith.constant 0 : index
    %c0_4 = arith.constant 0 : index
    %3 = vector.load %arg3[%c0_3, %c0_4] : memref<16x1xf32, #tpu.memory_space<vmem>>, vector<16x1xf32>
    %4 = vector.broadcast %3 : vector<16x1xf32> to vector<16x8xf32>
    %5 = arith.addf %2, %4 : vector<16x8xf32>
    %cst_5 = arith.constant 0.000000e+00 : f32
    %6 = vector.broadcast %cst_5 : f32 to vector<16x8xf32>
    %7 = arith.maximumf %5, %6 : vector<16x8xf32>
    %c0_6 = arith.constant 0 : index
    %c0_7 = arith.constant 0 : index
    %8 = vector.load %arg4[%c0_6, %c0_7] : memref<8x16xf32, #tpu.memory_space<vmem>>, vector<8x16xf32>
    %cst_8 = arith.constant dense<0.000000e+00> : vector<8x8xf32>
    %9 = tpu.matmul %8, %7, %cst_8 {dimension_numbers = #tpu.dot_dimension_numbers<[1], [0], [0], [1], [0, 0, 1, 1], [], []>, precision = #tpu.contract_precision<fp32>} : vector<8x16xf32>, vector<16x8xf32>, vector<8x8xf32> -> vector<8x8xf32>
    %c0_9 = arith.constant 0 : index
    %c0_10 = arith.constant 0 : index
    %10 = vector.load %arg5[%c0_9, %c0_10] : memref<8x1xf32, #tpu.memory_space<vmem>>, vector<8x1xf32>
    %11 = vector.broadcast %10 : vector<8x1xf32> to vector<8x8xf32>
    %12 = arith.addf %9, %11 : vector<8x8xf32>
    %cst_11 = arith.constant 0.000000e+00 : f32
    %13 = vector.broadcast %cst_11 : f32 to vector<8x8xf32>
    %14 = arith.maximumf %12, %13 : vector<8x8xf32>
    %c0_12 = arith.constant 0 : index
    %c0_13 = arith.constant 0 : index
    %15 = vector.load %arg6[%c0_12, %c0_13] : memref<1x8xf32, #tpu.memory_space<vmem>>, vector<1x8xf32>
    %cst_14 = arith.constant dense<0.000000e+00> : vector<1x8xf32>
    %16 = tpu.matmul %15, %14, %cst_14 {dimension_numbers = #tpu.dot_dimension_numbers<[1], [0], [0], [1], [0, 0, 1, 1], [], []>, precision = #tpu.contract_precision<fp32>} : vector<1x8xf32>, vector<8x8xf32>, vector<1x8xf32> -> vector<1x8xf32>
    %c0_15 = arith.constant 0 : index
    %c0_16 = arith.constant 0 : index
    %17 = vector.load %arg7[%c0_15, %c0_16] : memref<1x1xf32, #tpu.memory_space<vmem>>, vector<1x1xf32>
    %18 = vector.broadcast %17 : vector<1x1xf32> to vector<1x8xf32>
    %19 = arith.addf %16, %18 : vector<1x8xf32>
    %20 = arith.negf %19 : vector<1x8xf32>
    %21 = math.exp %20 : vector<1x8xf32>
    %cst_17 = arith.constant 1.000000e+00 : f32
    %22 = vector.broadcast %cst_17 : f32 to vector<1x8xf32>
    %23 = arith.addf %22, %21 : vector<1x8xf32>
    %24 = arith.divf %22, %23 : vector<1x8xf32>
    %c0_18 = arith.constant 0 : index
    %c0_19 = arith.constant 0 : index
    %25 = vector.load %arg8[%c0_18, %c0_19] : memref<1x8xf32, #tpu.memory_space<vmem>>, vector<1x8xf32>
    tpu.vector_store %arg8[%c0_18, %c0_19], %24 {strides = array<i32>} : memref<1x8xf32, #tpu.memory_space<vmem>>, vector<1x8xf32>,
    return
  }
  func.func @transform_0(%arg0: i32) -> (i32, i32) {
    %c0_i32 = arith.constant 0 : i32
    %c0_i32_0 = arith.constant 0 : i32
    return %arg0, %c0_i32 : i32, i32
  }
  func.func @transform_1(%arg0: i32) -> (i32, i32) {
    %c0_i32 = arith.constant 0 : i32
    %c0_i32_0 = arith.constant 0 : i32
    %c0_i32_1 = arith.constant 0 : i32
    return %c0_i32, %c0_i32_0 : i32, i32
  }
  func.func @transform_2(%arg0: i32) -> (i32, i32) {
    %c0_i32 = arith.constant 0 : i32
    %c0_i32_0 = arith.constant 0 : i32
    %c0_i32_1 = arith.constant 0 : i32
    return %c0_i32, %c0_i32_0 : i32, i32
  }
  func.func @transform_3(%arg0: i32) -> (i32, i32) {
    %c0_i32 = arith.constant 0 : i32
    %c0_i32_0 = arith.constant 0 : i32
    %c0_i32_1 = arith.constant 0 : i32
    return %c0_i32, %c0_i32_0 : i32, i32
  }
  func.func @transform_4(%arg0: i32) -> (i32, i32) {
    %c0_i32 = arith.constant 0 : i32
    %c0_i32_0 = arith.constant 0 : i32
    %c0_i32_1 = arith.constant 0 : i32
    return %c0_i32, %c0_i32_0 : i32, i32
  }
  func.func @transform_5(%arg0: i32) -> (i32, i32) {
    %c0_i32 = arith.constant 0 : i32
    %c0_i32_0 = arith.constant 0 : i32
    %c0_i32_1 = arith.constant 0 : i32
    return %c0_i32, %c0_i32_0 : i32, i32
  }
  func.func @transform_6(%arg0: i32) -> (i32, i32) {
    %c0_i32 = arith.constant 0 : i32
    %c0_i32_0 = arith.constant 0 : i32
    %c0_i32_1 = arith.constant 0 : i32
    return %c0_i32, %c0_i32_0 : i32, i32
  }
  func.func @transform_7(%arg0: i32) -> (i32, i32) {
    %c0_i32 = arith.constant 0 : i32
    %c0_i32_0 = arith.constant 0 : i32
    return %arg0, %c0_i32 : i32, i32
  }
}

</mosaic_0001>

<bundles_post_ra>
// kernel: tpu_custom_call.1
= control target key start
LH: loop header
LB: loop body
LE: loop exit
PB: predicated region body
PF: predicated region fallthrough
CT: control target
= control target key end

     0   :  { %s1851_s0 = inlined_call_operand.vmem [shape: f32[8,32], index: 0, kind: input, shape index: {}]   ;;  %s1852_s1 = inlined_call_operand.vmem [shape: f32[16,32], index: 1, kind: input, shape index: {}]   ;;  %s1853_s2 = inlined_call_operand.vmem [shape: f32[16,1], index: 2, kind: input, shape index: {}]   ;;  %s1854_s3 = inlined_call_operand.vmem [shape: f32[8,16], index: 3, kind: input, shape index: {}]   ;;  %s1855_s4 = inlined_call_operand.vmem [shape: f32[8,1], index: 4, kind: input, shape index: {}]   ;;  %s1856_s5 = inlined_call_operand.vmem [shape: f32[1,8], index: 5, kind: input, shape index: {}]   ;;  %s1857_s6 = inlined_call_operand.<no memory space> [shape: f32[1,1], index: 6, kind: input, shape index: {}]   ;;  %s1858_s7 = inlined_call_operand.hbm [shape: f32[1,8], index: 7, kind: output, shape index: {}]  }
   0x1   :  { %v12_v0 = vstv %s1857_s6 }
   0x2   :  { %13 = vst [vmem:[#allocation2] sm:$0x1] %v12_v0 }
   0x3   :  { %v29_v1 = vld [vmem:[%s1851_s0] sm:$0xff]  ;;  %vm44_vm0 = vcmask 261120   ;;  %v31_v3 = vld [vmem:[%s1852_s1 + $0x8] sm:$0xff]  ;;  %v1737_v7 = vmov 0  }
   0x4   :  { %v30_v2 = vld [vmem:[%s1852_s1] sm:$0xff]  ;;  %v52_v4 = vsel %vm44_vm0, %v29_v1, 0  ;;  %v49_v6 = vsel %vm44_vm0, %v31_v3, 0  ;;  %1707 = vset.pattern.permute.xlu0 %v1737_v7  ;;  %1708 = vset.pattern.permute.xlu1 %v1737_v7 }
   0x5   :  { %v46_v5 = vsel %vm44_vm0, %v30_v2, 0  ;;  %v32_v8 = vld [vmem:[%s1853_s2] sm:$0xff]  ;;  %v55_v9 = vand.u32 4294901760, %v52_v4  ;;  %v130_v11 = vand.u32 4294901760, %v49_v6 }
   0x6   :  { %v120_v10 = vand.u32 4294901760, %v46_v5  ;;  %36 = vperm.xlu0 %1707, %v32_v8  }
   0x7   :  { %14 = vsyncpa [#allocation4], 0  ;;  %v33_v12 = vld [vmem:[%s1853_s2 + $0x8] sm:$0xff]  ;;  %1563 = vmatprep.subr.mxu0 %v55_v9  ;;  %1548 = vmatprep.subr.mxu1 %v55_v9  ;;  %v131_v14 = vsub.f32 %v49_v6, %v130_v11  ;;  %v142_v15 = vsub.f32 %v52_v4, %v55_v9  ;;  %v1738_v25 = vmov 0.0|0.0   ;;  %vm1739_vm1 = vmmov 0   ;;  %v546_v27 = vld [vmem:[%s1855_s4] sm:$0xff] }
   0x8   :  { %v121_v13 = vsub.f32 %v46_v5, %v120_v10  ;;  %1564 = vmatpush3.xpose.msra.mxu0 %v55_v9  ;;  %1549 = vmatpush3.xpose.msra.mxu1 %v55_v9  ;;  %v1740_v26 = vmov 0.0   ;;  %v545_v29 = vld [vmem:[%s1854_s3] sm:$0xff]  ;;  %vm552_vm2 = vcmask 130048   ;;  %vm1027_vm3 = vcmask 64512  }
   0x9   :  { %v132_v17 = vand.u32 4294901760, %v131_v14  ;;  %v143_v18 = vand.u32 4294901760, %v142_v15  ;;  %549 = vperm.xlu1 %1708, %v546_v27   ;;  %v1017_v28 = vld [vmem:[#allocation2] sm:$0x1]  ;;  %v554_v30 = vsel %vm552_vm2, %v545_v29, 0  ;;  %vm1483_vm4 = vcmask 57344  }
   0xa   :  { %v122_v16 = vand.u32 4294901760, %v121_v13  ;;  %41 = vperm.xlu0 %1707, %v33_v12   ;;  %v623_v32 = vand.u32 4294901760, %v554_v30  ;;  %v1016_v62 = vld [vmem:[%s1856_s5] sm:$0x1]  ;;  %s1741_s5 = smov [#allocation3]  }
   0xb   :  { %v133_v20 = vsub.f32 %v131_v14, %v132_v17  ;;  %1568 = vmatprep.subr.mxu0 %v143_v18  ;;  %v144_v21 = vsub.f32 %v142_v15, %v143_v18  ;;  %v1029_v63 = vsel %vm1027_vm3, %v1016_v62, 0  ;;  %s1491_s13 = sshll.u32 %s1741_s5, 4  ;;  %s1492_s13 = int_to_ptr.vmem [resolvable:$true] %s1491_s13 }
   0xc   :  { %1565 = vmatprep.mubr.f32.mxu0 %v122_v16  ;;  %v123_v19 = vsub.f32 %v121_v13, %v122_v16  ;;  %v624_v35 = vsub.f32 %v554_v30, %v623_v32  ;;  %v1097_v0 = vand.u32 4294901760, %v1029_v63  ;;  %s1713_s14 = scalar_lea.vmem %s1492_s13, 16  ;;  %s1717_s15 = scalar_lea.vmem %s1492_s13, 32 }
   0xd   :  { %1566 = vmatmul.mubr.f32.vlgmr.msra.gmra.mrb[0].mxu0 %v132_v17  ;;  %v134_v23 = vand.u32 4294901760, %v133_v20  ;;  %v145_v24 = vand.u32 4294901760, %v144_v21  ;;  %1020 = vperm.xlu1 %1708, %v1017_v28   ;;  %p1714_p0 = scmp.ne.s32.totalorder %s1492_s13, %s1713_s14  ;;  %p1718_p1 = scmp.lt.s32.totalorder %s1492_s13, %s1492_s13 }
   0xe   :  { %v124_v22 = vand.u32 4294901760, %v123_v19  ;;  %1569 = vmatpush3.xpose.msra.mxu0 %v143_v18  ;;  %1570 = vmatprep.mubr.f32.mxu0 %v120_v10  ;;  %v625_v42 = vand.u32 4294901760, %v624_v35  ;;  %v1098_v1 = vsub.f32 %v1029_v63, %v1097_v0  ;;  %p1719_p2 = scmp.lt.s32.totalorder %s1717_s15, %s1713_s14 }
   0xf   :  { %1573 = vmatprep.subr.mxu0 %v55_v9  ;;  %1553 = vmatprep.subr.mxu1 %v145_v24 }
  0x10   :  { %1550 = vmatprep.mubr.f32.mxu1 %v124_v22  ;;  %v626_v47 = vsub.f32 %v624_v35, %v625_v42  ;;  %v1099_v2 = vand.u32 4294901760, %v1098_v1  ;;  %p1720_p3 = por %p1719_p2, %p1718_p1 }
  0x11   :  { %1551 = vmatmul.mubr.f32.vlgmr.msra.gmra.mrb[0].mxu1 %v134_v23 }
  0x12   :  { %1554 = vmatpush3.xpose.msra.mxu1 %v145_v24  ;;  %1555 = vmatprep.mubr.f32.mxu1 %v120_v10  ;;  %v627_v53 = vand.u32 4294901760, %v626_v47  ;;  %v1100_v5 = vsub.f32 %v1098_v1, %v1099_v2  ;;  %p1721_p4 = pnand %p1720_p3, %p1714_p0 }
  0x13   :  { %1558 = vmatprep.subr.mxu1 %v142_v15 }
  0x15   :  { %1571 = vmatmul.mubr.f32.vlgmr.msra.gmra.mrb[0].mxu0 %v130_v11 }
  0x16   :  { %1574 = vmatpush3.xpose.msra.mxu0 %v55_v9  ;;  %1575 = vmatprep.mubr.f32.mxu0 %v120_v10  ;;  %v1101_v9 = vand.u32 4294901760, %v1100_v5 }
  0x17   :  { %1620 = vmatprep.subr.mxu0 %v1740_v26 }
  0x19   :  { %1556 = vmatmul.mubr.f32.vlgmr.msra.gmra.mrb[0].mxu1 %v130_v11 }
  0x1a   :  { %1559 = vmatpush3.xpose.msra.mxu1 %v142_v15  ;;  %1560 = vmatprep.mubr.f32.mxu1 %v121_v13  ;;  %v1023_v15 = vlaneseq }
  0x1b   :  { %1650 = vmatprep.subr.bf16.mxu1 %v1738_v25 }
  0x1c   :  { %v1024_v16 = vshrl.u32 %v1023_v15, 7 }
  0x1d   :  { %1576 = vmatmul.mubr.f32.vlgmr.msra.gmra.mrb[0].mxu0 %v130_v11 }
  0x1e   :  { %1622 = vmatprep.mubr.msk.f32.mxu0 %vm1739_vm1, %v1740_v26  ;;  %v1025_v17 = vsub.s32 0, %v1024_v16 }
  0x21   :  { %1561 = vmatmul.mubr.f32.vlgmr.msra.gmra.mrb[0].mxu1 %v131_v14 }
  0x22   :  { %1582 = vmatprep.mubr.msk.f32.mxu1 %vm1739_vm1, %v1740_v26 }
  0x85   :  { %v37_v31 = vpop.permute.xlu0 %36 }
  0x88   :  { %v550_v3 = vpop.permute.xlu1 %549 }
  0x89   :  { %v42_v36 = vpop.permute.xlu0 %41 }
  0x8c   :  { %v1021_v18 = vpop.permute.xlu1 %1020 }
  0x8d   :  { %v1026_v19 = vrot.slane %v1021_v18, %v1025_v17 }
  0xf0   :  { %v1577_v33 = vpop.f32.mrb[0].mxu0 }
  0xf1   :  { %v533_v34 = vpop.f32.mrb[1].mxu0 }
  0xf4   :  { %v1562_v37 = vpop.f32.mrb[0].mxu1 }
  0xf5   :  { %v1668_v38 = vadd.f32 %v1562_v37, %v42_v36  ;;  %v292_v39 = vpop.f32.mrb[1].mxu1 }
  0xf6   :  { %v1670_v40 = vadd.f32 %v292_v39, %v37_v31 }
  0xf7   :  { %v1669_v41 = vadd.f32 %v1668_v38, %v1577_v33 }
  0xf8   :  { %v1671_v43 = vadd.f32 %v1670_v40, %v533_v34 }
  0xf9   :  { %v544_v44 = vmax.f32 %v1669_v41, 0.0 }
  0xfa   :  { %v543_v45 = vmax.f32 %v1671_v43, 0.0 }
  0xfb   :  { %v560_v46 = vand.u32 4294901760, %v544_v44 }
  0xfc   :  { %v557_v48 = vand.u32 4294901760, %v543_v45 }
  0xfd   :  { %v642_v49 = vsub.f32 %v544_v44, %v560_v46 }
  0xfe   :  { %v1651_v50 = vpack.c.bf16 %v560_v46, %v557_v48  ;;  %v635_v51 = vsub.f32 %v543_v45, %v557_v48 }
  0xff   :  { %v643_v52 = vand.u32 4294901760, %v642_v49 }
 0x100   :  { %v636_v54 = vand.u32 4294901760, %v635_v51  ;;  %1652 = vmatpush3.bf16.msra.mxu1 %v1651_v50  ;;  %v1657_v55 = vpack.c.bf16 %v642_v49, %v635_v51 }
 0x101   :  { %v644_v56 = vsub.f32 %v642_v49, %v643_v52  ;;  %1653 = vmatprep.subr.bf16.mxu1 %v1738_v25 }
 0x102   :  { %v637_v57 = vsub.f32 %v635_v51, %v636_v54  ;;  %v1663_v58 = vpack.c.bf16 %v643_v52, %v636_v54 }
 0x103   :  { %1583 = vmatmul.mubr.f32.vlgmr.msra.gmra.mrb[2].mxu1 %v627_v53  ;;  %v645_v59 = vand.u32 4294901760, %v644_v56 }
 0x104   :  { %v638_v60 = vand.u32 4294901760, %v637_v57  ;;  %1589 = vmatprep.mubr.msk.f32.mxu1 %vm1739_vm1, %v1740_v26 }
 0x106   :  { %v1654_v61 = vpack.c.bf16 %v645_v59, %v638_v60 }
 0x108   :  { %1655 = vmatpush3.bf16.msra.mxu1 %v1654_v61 }
 0x109   :  { %1656 = vmatprep.subr.bf16.mxu1 %v1738_v25 }
 0x10b   :  { %1590 = vmatmul.mubr.f32.vlgmr.msra.gmra.mrb[2].mxu1 %v623_v32 }
 0x10c   :  { %1658 = vmatpush3.bf16.msra.mxu1 %v1657_v55  ;;  %1596 = vmatprep.mubr.msk.f32.mxu1 %vm1739_vm1, %v1740_v26 }
 0x10d   :  { %1659 = vmatprep.subr.bf16.mxu1 %v1738_v25 }
 0x113   :  { %1597 = vmatmul.mubr.f32.vlgmr.msra.gmra.mrb[2].mxu1 %v624_v35 }
 0x114   :  { %1661 = vmatpush3.bf16.msra.mxu1 %v1651_v50  ;;  %1603 = vmatprep.mubr.msk.f32.mxu1 %vm1739_vm1, %v1740_v26 }
 0x115   :  { %1662 = vmatprep.subr.bf16.mxu1 %v1738_v25 }
 0x11b   :  { %1604 = vmatmul.mubr.f32.vlgmr.msra.gmra.mrb[2].mxu1 %v625_v42 }
 0x11c   :  { %1664 = vmatpush3.bf16.msra.mxu1 %v1663_v58  ;;  %1610 = vmatprep.mubr.msk.f32.mxu1 %vm1739_vm1, %v1740_v26 }
 0x11d   :  { %1665 = vmatprep.subr.bf16.mxu1 %v1738_v25 }
 0x123   :  { %1611 = vmatmul.mubr.f32.vlgmr.msra.gmra.mrb[2].mxu1 %v623_v32 }
 0x124   :  { %1667 = vmatpush3.bf16.msra.mxu1 %v1651_v50  ;;  %1617 = vmatprep.mubr.msk.f32.mxu1 %vm1739_vm1, %v1740_v26 }
 0x12b   :  { %1618 = vmatmul.mubr.f32.vlgmr.msra.gmra.mrb[2].mxu1 %v623_v32 }
 0x1fe   :  { %v1011_v4 = vpop.f32.mrb[2].mxu1 }
 0x1ff   :  { %v1672_v6 = vadd.f32 %v1011_v4, %v550_v3  ;;  %v1619_v7 = vpop.f32.mrb[3].mxu1 }
 0x201   :  { %v1015_v8 = vmax.f32 %v1672_v6, 0.0 }
 0x203   :  { %v1032_v10 = vand.u32 4294901760, %v1015_v8 }
 0x205   :  { %v1109_v11 = vsub.f32 %v1015_v8, %v1032_v10  ;;  %1621 = vmatpush3.msra.mxu0 %v1032_v10 }
 0x206   :  { %1623 = vmatmul.mubr.f32.vlgmr.msra.gmra.mrb[2].mxu0 %v1101_v9  ;;  %1625 = vmatprep.subr.mxu0 %v1740_v26 }
 0x207   :  { %v1110_v12 = vand.u32 4294901760, %v1109_v11  ;;  %1627 = vmatprep.mubr.msk.f32.mxu0 %vm1739_vm1, %v1740_v26 }
 0x209   :  { %v1111_v13 = vsub.f32 %v1109_v11, %v1110_v12 }
 0x20b   :  { %v1112_v14 = vand.u32 4294901760, %v1111_v13 }
 0x20d   :  { %1626 = vmatpush3.msra.mxu0 %v1112_v14 }
 0x20e   :  { %1628 = vmatmul.mubr.f32.vlgmr.msra.gmra.mrb[2].mxu0 %v1097_v0  ;;  %1630 = vmatprep.subr.mxu0 %v1740_v26 }
 0x20f   :  { %1631 = vmatpush3.msra.mxu0 %v1109_v11  ;;  %1632 = vmatprep.mubr.msk.f32.mxu0 %vm1739_vm1, %v1740_v26 }
 0x210   :  { %1635 = vmatprep.subr.mxu0 %v1740_v26 }
 0x216   :  { %1633 = vmatmul.mubr.f32.vlgmr.msra.gmra.mrb[2].mxu0 %v1098_v1 }
 0x217   :  { %1636 = vmatpush3.msra.mxu0 %v1032_v10  ;;  %1637 = vmatprep.mubr.msk.f32.mxu0 %vm1739_vm1, %v1740_v26 }
 0x218   :  { %1640 = vmatprep.subr.mxu0 %v1740_v26 }
 0x21e   :  { %1638 = vmatmul.mubr.f32.vlgmr.msra.gmra.mrb[2].mxu0 %v1099_v2 }
 0x21f   :  { %1641 = vmatpush3.msra.mxu0 %v1110_v12  ;;  %1642 = vmatprep.mubr.msk.f32.mxu0 %vm1739_vm1, %v1740_v26 }
 0x220   :  { %1645 = vmatprep.subr.mxu0 %v1740_v26 }
 0x226   :  { %1643 = vmatmul.mubr.f32.vlgmr.msra.gmra.mrb[2].mxu0 %v1097_v0 }
 0x227   :  { %1646 = vmatpush3.msra.mxu0 %v1032_v10  ;;  %1647 = vmatprep.mubr.msk.f32.mxu0 %vm1739_vm1, %v1740_v26 }
 0x22e   :  { %1648 = vmatmul.mubr.f32.vlgmr.msra.gmra.mrb[2].mxu0 %v1097_v0 }
 0x301   :  { %v1473_v20 = vpop.f32.mrb[2].mxu0 }
 0x302   :  { %v1673_v21 = vadd.f32 %v1473_v20, %v1026_v19  ;;  %v1649_v22 = vpop.f32.mrb[3].mxu0 }
 0x304   :  { %v1499_v23 = vmul.f32 -1.442695, %v1673_v21 }
 0x306   :  { %1709 = vpow2.f32 %v1499_v23 }
 0x310   :  { %v1710_v24 = vpop.eup %1709 }
 0x311   :  { %v1480_v25 = vadd.f32 1.0, %v1710_v24 }
 0x313   :  { %1711 = vrcp.f32 %v1480_v25 }
 0x31d   :  { %v1712_v27 = vpop.eup %1711 }
 0x31e   :  { %1484 = vst.msk [vmem:[#allocation3] sm:$0x1] %vm1483_vm4, %v1712_v27 }
 0x31f   :  { %1724 = shalt.err (!%p1721_p4)
}
 0x320   :  { %s1725_s18 = scalar_lea.hbm %s1858_s7, 16 }
 0x321   :  { %p1726_p5 = scmp.ne.s32.totalorder %s1858_s7, %s1725_s18  ;;  %p1729_p6 = scmp.lt.u32.totalorder %s1725_s18, %s1858_s7 }
 0x323   :  { %p1731_p7 = pnand %p1729_p6, %p1726_p5 }
 0x325   :  { %1734 = shalt.err (!%p1731_p7)
}
 0x326   :  { %1494 = dma.vmem_to_hbm [thread:$0]  %s1492_s13, 16, %s1858_s7, [#allocation4]  }
 0x327   :  { %1735 = dma.done.wait [#allocation4], 16  }
 0x328   :  { %1736 = vsyncadd [#allocation4], 4294967280 }
 0x329   :  { %1498 = vsyncpa [#allocation4], 1 }

</bundles_post_ra>
